<compile_context>
chip_gen: v6e
topology: v6e:2x2x1
jax: 0.10.0
libtpu: 0.0.40
codegen_flags: <defaults>
</compile_context>

<pallas_src>
import functools

import jax
import jax.numpy as jnp
from jax.experimental import pallas as pl
from jax.experimental.pallas import tpu as pltpu


def _mlp_kernel(x_ref, w1_ref, b1_ref, w2_ref, b2_ref, w3_ref, b3_ref, o_ref):
    # Transposed layout: batch on the 128-lane axis.
    x = x_ref[...]                                                      # (F_in, TB)
    h1 = jnp.dot(w1_ref[...], x, preferred_element_type=jnp.float32) + b1_ref[...]
    h1 = jnp.maximum(h1, 0.0)                                           # (H, TB)
    h2 = jnp.dot(w2_ref[...], h1, preferred_element_type=jnp.float32) + b2_ref[...]
    h2 = jnp.maximum(h2, 0.0)                                           # (H, TB)
    out = jnp.dot(w3_ref[...], h2, preferred_element_type=jnp.float32) + b3_ref[...]
    o_ref[...] = out.astype(o_ref.dtype)                                # (F_out, TB) lane-dense store


def prepare_params(params):
    """Hoisted (once-per-model) layout glue.

    nn.Linear weights are (out_features, in_features), which is already the layout the
    transposed kernel needs (W @ x).  Biases become (out, 1) columns so they broadcast
    over the lane (batch) axis inside the kernel.
    """
    return {
        "w1": jnp.asarray(params["w1"], jnp.float32),
        "w2": jnp.asarray(params["w2"], jnp.float32),
        "w3": jnp.asarray(params["w3"], jnp.float32),
        "b1": jnp.asarray(params["b1"], jnp.float32)[:, None],
        "b2": jnp.asarray(params["b2"], jnp.float32)[:, None],
        "b3": jnp.asarray(params["b3"], jnp.float32)[:, None],
    }


def _round_up(n, m):
    return ((n + m - 1) // m) * m


@functools.partial(jax.jit, static_argnames=("block_batch",))
def linear_regression_model(x, kparams, *, block_batch=32768):
    """x: (B, F_in) float32 (PyTorch convention); kparams: output of prepare_params."""
    w1, b1 = kparams["w1"], kparams["b1"]
    w2, b2 = kparams["w2"], kparams["b2"]
    w3, b3 = kparams["w3"], kparams["b3"]

    B, f_in = x.shape
    H = w1.shape[0]
    f_out = w3.shape[0]

    # --- Tile / padding selection -------------------------------------------------
    # Padded batch: only to the next multiple of 128 (decoupled from the tile size).
    bp = _round_up(B, 128)
    # Lane tile: force a multiple of 128 regardless of caller input, cap by the padded
    # batch, and (for 2-TC chips) cap so the "parallel" grid axis has >= 2 steps.
    tb = max(128, _round_up(block_batch, 128))
    tb = min(tb, bp)
    if bp >= 256:
        tb = min(tb, _round_up(pl.cdiv(bp, 2), 128))
    grid = (pl.cdiv(bp, tb),)

    # --- Input staging: plain transpose (+ tiny 128-alignment pad), no zero slab ---
    xt = x.T                                                    # (F_in, B)
    if bp != B:
        xt = jnp.pad(xt, ((0, 0), (0, bp - B)))                 # pad fuses with producer

    resident = lambda shape: pl.BlockSpec(shape, lambda i: (0, 0))  # weights stay in VMEM

    flops = 2 * B * (f_in * H + H * H + H * f_out)
    bytes_accessed = 4 * (f_in * bp + f_out * bp
                          + H * f_in + H * H + f_out * H + 2 * H + f_out)

    out_t = pl.pallas_call(
        _mlp_kernel,
        out_shape=jax.ShapeDtypeStruct((f_out, bp), jnp.float32),
        grid=grid,
        in_specs=[
            pl.BlockSpec((f_in, tb), lambda i: (0, i)),    # x tile, lane-dense along batch
            resident((H, f_in)), resident((H, 1)),
            resident((H, H)), resident((H, 1)),
            resident((f_out, H)), resident((f_out, 1)),
        ],
        out_specs=pl.BlockSpec((f_out, tb), lambda i: (0, i)),  # lane-dense output slab
        compiler_params=pltpu.CompilerParams(
            dimension_semantics=("parallel",)),            # megacore sharding on v7x
        cost_estimate=pl.CostEstimate(
            flops=flops, transcendentals=0, bytes_accessed=bytes_accessed),
    )(xt, w1, b1, w2, b2, w3, b3)

    # --- Epilogue: avoid a materialized transpose pass over the output -------------
    if f_out == 1:
        return out_t[0, :B][:, None]                       # reshape of a slice, no transpose
    # TODO(synk): for general f_out, returning (f_out, B) and fusing the transpose into
    # the consumer would avoid this extra pass; kept here to match the (B, f_out) API.
    return out_t[:, :B].T


def init_params(key, input_features, output_features, hidden_units=8):
    """Deterministic init matching nn.Linear shapes (weight: (out, in), bias: (out,))."""
    ks = jax.random.split(key, 6)

    def linear_init(kw, kb, fan_in, fan_out):
        bound = 1.0 / jnp.sqrt(fan_in)
        w = jax.random.uniform(kw, (fan_out, fan_in), jnp.float32, -bound, bound)
        b = jax.random.uniform(kb, (fan_out,), jnp.float32, -bound, bound)
        return w, b

    w1, b1 = linear_init(ks[0], ks[1], input_features, hidden_units)
    w2, b2 = linear_init(ks[2], ks[3], hidden_units, hidden_units)
    w3, b3 = linear_init(ks[4], ks[5], hidden_units, output_features)
    return {"w1": w1, "b1": b1, "w2": w2, "b2": b2, "w3": w3, "b3": b3}


def _reference(x, params):
    h = jnp.maximum(x @ params["w1"].T + params["b1"], 0.0)
    h = jnp.maximum(h @ params["w2"].T + params["b2"], 0.0)
    return h @ params["w3"].T + params["b3"]


if __name__ == "__main__":
    key = jax.random.PRNGKey(0)
    k_x, k_p = jax.random.split(key)

    batch = 8
    input_features = 4
    output_features = 1
    hidden_units = 8

    x = jax.random.normal(k_x, (batch, input_features), jnp.float32)
    params = init_params(k_p, input_features, output_features, hidden_units)
    kparams = prepare_params(params)   # one-time layout prep (hoisted out of forward)

    out = linear_regression_model(x, kparams)
    jax.block_until_ready(out)

    ref = _reference(x, params)
    assert out.shape == (batch, output_features)
    assert jnp.allclose(out, ref, atol=1e-5), "mismatch vs reference"

    # Larger batch: exercises the 128-padding path and the multi-tile (>=2-step) grid.
    x_big = jax.random.normal(k_x, (1000, input_features), jnp.float32)
    out_big = linear_regression_model(x_big, kparams)
    jax.block_until_ready(out_big)
    ref_big = _reference(x_big, params)
    assert out_big.shape == (1000, output_features)
    assert jnp.allclose(out_big, ref_big, atol=1e-5), "mismatch vs reference (big batch)"

    print("KERNEL_OK")
</pallas_src>

<mosaic_0001>
module attributes {stable_mosaic.version = 11 : i64} {
  func.func @_mlp_kernel(%arg0: i32, %arg1: memref<4x128xf32, #tpu.memory_space<vmem>>, %arg2: memref<8x4xf32, #tpu.memory_space<vmem>>, %arg3: memref<8x1xf32, #tpu.memory_space<vmem>>, %arg4: memref<8x8xf32, #tpu.memory_space<vmem>>, %arg5: memref<8x1xf32, #tpu.memory_space<vmem>>, %arg6: memref<1x8xf32, #tpu.memory_space<vmem>>, %arg7: memref<1x1xf32, #tpu.memory_space<vmem>>, %arg8: memref<1x128xf32, #tpu.memory_space<vmem>>) attributes {dimension_semantics = [#tpu.dimension_semantics<parallel>], iteration_bounds = array<i64: 1>, scalar_prefetch = 0 : i64, scratch_operands = 0 : i64, tpu.core_type = #tpu.core_type<tc>, window_params = [{transform_indices = @transform_0, window_bounds = array<i64: 4, 128>}, {pipeline_mode = #tpu.pipeline_mode<synchronous>, transform_indices = @transform_1, window_bounds = array<i64: 8, 4>}, {pipeline_mode = #tpu.pipeline_mode<synchronous>, transform_indices = @transform_2, window_bounds = array<i64: 8, 1>}, {pipeline_mode = #tpu.pipeline_mode<synchronous>, transform_indices = @transform_3, window_bounds = array<i64: 8, 8>}, {pipeline_mode = #tpu.pipeline_mode<synchronous>, transform_indices = @transform_4, window_bounds = array<i64: 8, 1>}, {pipeline_mode = #tpu.pipeline_mode<synchronous>, transform_indices = @transform_5, window_bounds = array<i64: 1, 8>}, {pipeline_mode = #tpu.pipeline_mode<synchronous>, transform_indices = @transform_6, window_bounds = array<i64: 1, 1>}, {transform_indices = @transform_7, window_bounds = array<i64: 1, 128>}]} {
    %c0 = arith.constant 0 : index
    %c0_0 = arith.constant 0 : index
    %0 = vector.load %arg1[%c0, %c0_0] : memref<4x128xf32, #tpu.memory_space<vmem>>, vector<4x128xf32>
    %c0_1 = arith.constant 0 : index
    %c0_2 = arith.constant 0 : index
    %1 = vector.load %arg2[%c0_1, %c0_2] : memref<8x4xf32, #tpu.memory_space<vmem>>, vector<8x4xf32>
    %cst = arith.constant dense<0.000000e+00> : vector<8x128xf32>
    %2 = tpu.matmul %1, %0, %cst {dimension_numbers = #tpu.dot_dimension_numbers<[1], [0], [0], [1], [0, 0, 1, 1], [], []>} : vector<8x4xf32>, vector<4x128xf32>, vector<8x128xf32> -> vector<8x128xf32>
    %c0_3 = arith.constant 0 : index
    %c0_4 = arith.constant 0 : index
    %3 = vector.load %arg3[%c0_3, %c0_4] : memref<8x1xf32, #tpu.memory_space<vmem>>, vector<8x1xf32>
    %4 = vector.broadcast %3 : vector<8x1xf32> to vector<8x128xf32>
    %5 = arith.addf %2, %4 : vector<8x128xf32>
    %cst_5 = arith.constant 0.000000e+00 : f32
    %6 = vector.broadcast %cst_5 : f32 to vector<8x128xf32>
    %7 = arith.maximumf %5, %6 : vector<8x128xf32>
    %c0_6 = arith.constant 0 : index
    %c0_7 = arith.constant 0 : index
    %8 = vector.load %arg4[%c0_6, %c0_7] : memref<8x8xf32, #tpu.memory_space<vmem>>, vector<8x8xf32>
    %cst_8 = arith.constant dense<0.000000e+00> : vector<8x128xf32>
    %9 = tpu.matmul %8, %7, %cst_8 {dimension_numbers = #tpu.dot_dimension_numbers<[1], [0], [0], [1], [0, 0, 1, 1], [], []>} : vector<8x8xf32>, vector<8x128xf32>, vector<8x128xf32> -> vector<8x128xf32>
    %c0_9 = arith.constant 0 : index
    %c0_10 = arith.constant 0 : index
    %10 = vector.load %arg5[%c0_9, %c0_10] : memref<8x1xf32, #tpu.memory_space<vmem>>, vector<8x1xf32>
    %11 = vector.broadcast %10 : vector<8x1xf32> to vector<8x128xf32>
    %12 = arith.addf %9, %11 : vector<8x128xf32>
    %cst_11 = arith.constant 0.000000e+00 : f32
    %13 = vector.broadcast %cst_11 : f32 to vector<8x128xf32>
    %14 = arith.maximumf %12, %13 : vector<8x128xf32>
    %c0_12 = arith.constant 0 : index
    %c0_13 = arith.constant 0 : index
    %15 = vector.load %arg6[%c0_12, %c0_13] : memref<1x8xf32, #tpu.memory_space<vmem>>, vector<1x8xf32>
    %cst_14 = arith.constant dense<0.000000e+00> : vector<1x128xf32>
    %16 = tpu.matmul %15, %14, %cst_14 {dimension_numbers = #tpu.dot_dimension_numbers<[1], [0], [0], [1], [0, 0, 1, 1], [], []>} : vector<1x8xf32>, vector<8x128xf32>, vector<1x128xf32> -> vector<1x128xf32>
    %c0_15 = arith.constant 0 : index
    %c0_16 = arith.constant 0 : index
    %17 = vector.load %arg7[%c0_15, %c0_16] : memref<1x1xf32, #tpu.memory_space<vmem>>, vector<1x1xf32>
    %18 = vector.broadcast %17 : vector<1x1xf32> to vector<1x128xf32>
    %19 = arith.addf %16, %18 : vector<1x128xf32>
    %c0_17 = arith.constant 0 : index
    %c0_18 = arith.constant 0 : index
    %20 = vector.load %arg8[%c0_17, %c0_18] : memref<1x128xf32, #tpu.memory_space<vmem>>, vector<1x128xf32>
    tpu.vector_store %arg8[%c0_17, %c0_18], %19 {strides = array<i32>} : memref<1x128xf32, #tpu.memory_space<vmem>>, vector<1x128xf32>,
    return
  }
  func.func @transform_0(%arg0: i32) -> (i32, i32) {
    %c0_i32 = arith.constant 0 : i32
    %c0_i32_0 = arith.constant 0 : i32
    return %c0_i32, %arg0 : i32, i32
  }
  func.func @transform_1(%arg0: i32) -> (i32, i32) {
    %c0_i32 = arith.constant 0 : i32
    %c0_i32_0 = arith.constant 0 : i32
    %c0_i32_1 = arith.constant 0 : i32
    return %c0_i32, %c0_i32_0 : i32, i32
  }
  func.func @transform_2(%arg0: i32) -> (i32, i32) {
    %c0_i32 = arith.constant 0 : i32
    %c0_i32_0 = arith.constant 0 : i32
    %c0_i32_1 = arith.constant 0 : i32
    return %c0_i32, %c0_i32_0 : i32, i32
  }
  func.func @transform_3(%arg0: i32) -> (i32, i32) {
    %c0_i32 = arith.constant 0 : i32
    %c0_i32_0 = arith.constant 0 : i32
    %c0_i32_1 = arith.constant 0 : i32
    return %c0_i32, %c0_i32_0 : i32, i32
  }
  func.func @transform_4(%arg0: i32) -> (i32, i32) {
    %c0_i32 = arith.constant 0 : i32
    %c0_i32_0 = arith.constant 0 : i32
    %c0_i32_1 = arith.constant 0 : i32
    return %c0_i32, %c0_i32_0 : i32, i32
  }
  func.func @transform_5(%arg0: i32) -> (i32, i32) {
    %c0_i32 = arith.constant 0 : i32
    %c0_i32_0 = arith.constant 0 : i32
    %c0_i32_1 = arith.constant 0 : i32
    return %c0_i32, %c0_i32_0 : i32, i32
  }
  func.func @transform_6(%arg0: i32) -> (i32, i32) {
    %c0_i32 = arith.constant 0 : i32
    %c0_i32_0 = arith.constant 0 : i32
    %c0_i32_1 = arith.constant 0 : i32
    return %c0_i32, %c0_i32_0 : i32, i32
  }
  func.func @transform_7(%arg0: i32) -> (i32, i32) {
    %c0_i32 = arith.constant 0 : i32
    %c0_i32_0 = arith.constant 0 : i32
    return %c0_i32, %arg0 : i32, i32
  }
}

</mosaic_0001>

<bundles_post_ra>
// kernel: linear_regression_model.1
= control target key start
LH: loop header
LB: loop body
LE: loop exit
PB: predicated region body
PF: predicated region fallthrough
CT: control target
= control target key end

     0   :  { %vm40_vm0 = vcmask 1043456   ;;  %vm36_vm1 = vcmask 31744   ;;  %v316_v0 = vmov 0.0   ;;  %vm317_vm2 = vmmov 0   ;;  %s385_s0 = inlined_call_operand.vmem [shape: f32[4,128], index: 0, kind: input, shape index: {}]   ;;  %s386_s1 = inlined_call_operand.vmem [shape: f32[8,4], index: 1, kind: input, shape index: {}]   ;;  %s387_s2 = inlined_call_operand.vmem [shape: f32[8,1], index: 2, kind: input, shape index: {}]   ;;  %s388_s4 = inlined_call_operand.vmem [shape: f32[8,1], index: 4, kind: input, shape index: {}]   ;;  %s389_s3 = inlined_call_operand.vmem [shape: f32[8,8], index: 3, kind: input, shape index: {}]   ;;  %s390_s6 = inlined_call_operand.<no memory space> [shape: f32[1,1], index: 6, kind: input, shape index: {}]   ;;  %s391_s5 = inlined_call_operand.vmem [shape: f32[1,8], index: 5, kind: input, shape index: {}]   ;;  %s392_s7 = inlined_call_operand.vmem [shape: f32[1,128], index: 7, kind: output, shape index: {}]  }
   0x1   :  { %296 = vmatprep.subr.mxu0 %v316_v0  ;;  %v28_v1 = vld [vmem:[%s385_s0] sm:$0xf]  ;;  %298 = vmatprep.mubr.msk.f32.mxu0 %vm317_vm2, %v316_v0  ;;  %v318_v4 = vmov 0   ;;  %vm122_vm3 = vcmask 64512   ;;  %v12_v12 = vstv %s390_s6  ;;  %v204_v20 = vlaneseq }
   0x2   :  { %v29_v2 = vld [vmem:[%s386_s1] sm:$0xff]  ;;  %297 = vmatpush3.msk.msra.mxu0 %vm40_vm0, %v28_v1  ;;  %314 = vset.pattern.permute.xlu0 %v318_v4  ;;  %13 = vst [vmem:[#allocation2] sm:$0x1] %v12_v12 }
   0x3   :  { %v30_v3 = vld [vmem:[%s387_s2] sm:$0xff]  ;;  %299 = vmatmul.mubr.msk.f32.vlgmr.msra.gmra.mxu0 %vm36_vm1, %v29_v2  ;;  %301 = vmatprep.subr.mxu1 %v316_v0  ;;  %v205_v21 = vshrl.u32 %v204_v20, 7 }
   0x4   :  { %33 = vperm.xlu0 %314, %v30_v3   ;;  %v116_v5 = vld [vmem:[%s388_s4] sm:$0xff]  ;;  %303 = vmatprep.mubr.msk.f32.mxu1 %vm317_vm2, %v316_v0 }
   0x5   :  { %306 = vmatprep.subr.mxu0 %v316_v0  ;;  %308 = vmatprep.mubr.msk.f32.mxu0 %vm317_vm2, %v316_v0  ;;  %v115_v11 = vld [vmem:[%s389_s3] sm:$0xff]  ;;  %v206_v22 = vsub.s32 0, %v205_v21 }
   0x6   :  { %315 = vset.pattern.permute.xlu1 %v318_v4  ;;  %v197_v19 = vld [vmem:[%s391_s5] sm:$0x1] }
   0x8   :  { %119 = vperm.xlu0 %314, %v116_v5  }
   0x9   :  { %v198_v13 = vld [vmem:[#allocation2] sm:$0x1] }
   0xa   :  { %201 = vperm.xlu1 %315, %v198_v13  }
  0x7f   :  { %v34_v6 = vpop.permute.xlu0 %33 }
  0x83   :  { %v120_v14 = vpop.permute.xlu0 %119 }
  0x85   :  { %v202_v23 = vpop.permute.xlu1 %201 }
  0x86   :  { %v207_v24 = vrot.slane %v202_v23, %v206_v22 }
  0xc3   :  { %v110_v7 = vpop.f32.mrf.mxu0 }
  0xc4   :  { %v111_v8 = vadd.f32 %v110_v7, %v34_v6 }
  0xc5   :  { %v300_v9 = vpop.f32.mrf.mxu0 }
  0xc6   :  { %v114_v10 = vmax.f32 %v111_v8, 0.0 }
  0xc8   :  { %302 = vmatpush3.msra.mxu1 %v114_v10 }
  0xc9   :  { %304 = vmatmul.mubr.msk.f32.vlgmr.msra.gmra.mxu1 %vm122_vm3, %v115_v11 }
 0x189   :  { %v192_v15 = vpop.f32.mrf.mxu1 }
 0x18a   :  { %v193_v16 = vadd.f32 %v192_v15, %v120_v14 }
 0x18b   :  { %v305_v17 = vpop.f32.mrf.mxu1 }
 0x18c   :  { %v196_v18 = vmax.f32 %v193_v16, 0.0 }
 0x18e   :  { %307 = vmatpush3.msra.mxu0 %v196_v18 }
 0x18f   :  { %309 = vmatmul.mubr.msk.f32.vlgmr.msra.gmra.mxu0 %vm122_vm3, %v197_v19 }
 0x24f   :  { %v277_v25 = vpop.f32.mrf.mxu0 }
 0x250   :  { %v278_v26 = vadd.f32 %v277_v25, %v207_v24 }
 0x251   :  { %v310_v27 = vpop.f32.mrf.mxu0 }
 0x252   :  { %281 = vst [vmem:[%s392_s7] sm:$0x1] %v278_v26 }

</bundles_post_ra>
